<compile_context>
chip_gen: v7x
topology: tpu7x:2x2x1
jax: 0.10.0
libtpu: 0.0.40
codegen_flags: <defaults>
</compile_context>

<pallas_src>
import functools

import jax
import jax.numpy as jnp
from jax.experimental import pallas as pl
from jax.experimental.pallas import tpu as pltpu

_MIB = 1024 * 1024


def _physical_vmem_bytes():
    try:
        return int(pltpu.get_tpu_info().vmem_capacity_bytes)
    except Exception:
        return 64 * _MIB          # conservative (v7x-sized) fallback


def _default_num_partitions():
    # Among the target chips only v7x has 2 TensorCores per chip.
    try:
        kind = jax.devices()[0].device_kind.lower()
    except Exception:
        return 1
    return 2 if "v7" in kind else 1


def _cb_loss_kernel(logits_ref, targets_ref, weights_ref, out_ref, acc_ref, *,
                    gamma, n_valid, tile_n, tiles_per_part):
    p = pl.program_id(0)           # batch partition (megacore axis)
    i = pl.program_id(1)           # streaming batch tile within the partition

    @pl.when(i == 0)
    def _():
        acc_ref[...] = jnp.zeros_like(acc_ref)

    logits = logits_ref[...].astype(jnp.float32)               # (TN, C)
    tgt = targets_ref[...]                                     # (TN, 1) int32
    w_all = weights_ref[...].astype(jnp.float32)               # (1, C) resident

    tn, c = logits.shape
    classes = jax.lax.broadcasted_iota(jnp.int32, (tn, c), 1)
    onehot = classes == tgt                                    # (TN, C) bool

    # stable logsumexp; exp terms reused below -> single exp pass over (TN, C)
    m = jnp.max(logits, axis=-1, keepdims=True)
    e = jnp.exp(logits - m)
    sum_e = jnp.sum(e, axis=-1, keepdims=True)
    lse = m + jnp.log(sum_e)

    # target logit / target exp / per-row class weight share the one-hot mask
    logit_t = jnp.sum(jnp.where(onehot, logits, 0.0), axis=-1, keepdims=True)
    e_t = jnp.sum(jnp.where(onehot, e, 0.0), axis=-1, keepdims=True)
    w_t = jnp.sum(jnp.where(onehot, w_all, 0.0), axis=-1, keepdims=True)

    ce = jnp.maximum(lse - logit_t, 0.0)                       # clamp fp noise
    pt = jnp.minimum(e_t / sum_e, 1.0)                         # = exp(-ce), no 2nd exp
    base = 1.0 - pt

    # (1 - pt) ** gamma : multiply chain for integer gamma (no exp/log pair)
    g = float(gamma)
    if g == 0.0:
        mod = jnp.ones_like(base)
    elif g.is_integer():
        mod = base
        for _ in range(int(g) - 1):
            mod = mod * base
    else:
        mod = base ** g

    focal = w_t * mod * ce                                     # (TN, 1)

    # mask rows introduced by batch padding (padded targets would hit class 0)
    row0 = (p * tiles_per_part + i) * tile_n
    row_idx = row0 + jax.lax.broadcasted_iota(jnp.int32, (tn, 1), 0)
    focal = jnp.where(row_idx < n_valid, focal, 0.0)

    acc_ref[...] += focal                                      # per-row accumulate

    @pl.when(i == pl.num_programs(1) - 1)
    def _():
        total = jnp.sum(acc_ref[...])                          # one reduce / partition
        out_ref[...] = jnp.broadcast_to(total, (1, 1, 1)).astype(out_ref.dtype)


def class_balanced_loss(logits, targets, weights, *, gamma=2.0, tile_n=None,
                        num_partitions=None):
    """logits: (N, C) f32/bf16, targets: (N,) int, weights: (C,) -> scalar."""
    n, c = logits.shape
    targets_2d = targets.astype(jnp.int32).reshape(n, 1)
    weights_2d = weights.astype(jnp.float32).reshape(1, c)

    if num_partitions is None:
        num_partitions = _default_num_partitions()
    num_partitions = max(1, int(num_partitions))

    elem_bytes = jnp.dtype(logits.dtype).itemsize

    # Chip-dependent scoped-VMEM ceiling (v5e/v6e: 128 MiB physical; v7x: 64).
    phys_vmem = _physical_vmem_bytes()
    vmem_cap = (80 if phys_vmem >= 96 * _MIB else 40) * _MIB

    # Per-row VMEM footprint: double-buffered logits + ~3x f32 compute
    # temporaries (upcast / exp / selects) + lane-padded (tile_n, 1) targets
    # (double-buffered) + lane-padded accumulator.
    per_row_bytes = 2 * c * elem_bytes + 3 * c * 4 + 2 * 128 * 4 + 128 * 4
    if tile_n is None:
        t = (vmem_cap - 6 * _MIB) // per_row_bytes
        tile_n = int(max(8, min(8192, (t // 8) * 8)))
    rows_per_part = -(-n // num_partitions)
    rows_per_part = ((rows_per_part + 7) // 8) * 8
    tile_n = int(min(tile_n, rows_per_part))

    chunk = num_partitions * tile_n
    n_pad = ((n + chunk - 1) // chunk) * chunk
    if n_pad != n:
        pad = n_pad - n
        logits = jnp.pad(logits, ((0, pad), (0, 0)))
        targets_2d = jnp.pad(targets_2d, ((0, pad), (0, 0)))
    tiles_per_part = n_pad // chunk

    # Explicit VMEM budget derived from the chosen tile (honest accounting).
    vmem_needed = (tile_n * per_row_bytes            # logits bufs + temps + side + acc
                   + 2 * 8 * max(c, 128) * 4         # resident (1, C) weights block
                   + 2 * _MIB)                       # slack
    vmem_limit = int(min(vmem_cap, max(32 * _MIB, vmem_needed)))

    kernel = functools.partial(_cb_loss_kernel, gamma=gamma, n_valid=n,
                               tile_n=tile_n, tiles_per_part=tiles_per_part)

    row_map = lambda p, i: (p * tiles_per_part + i, 0)

    cost = pl.CostEstimate(
        flops=int(8 * n_pad * c),
        transcendentals=int(n_pad * c + 2 * n_pad),
        bytes_accessed=int(n_pad * c * elem_bytes + n_pad * 4 + c * 4
                           + num_partitions * 4),
    )

    partials = pl.pallas_call(
        kernel,
        out_shape=jax.ShapeDtypeStruct((num_partitions, 1, 1), jnp.float32),
        grid_spec=pltpu.PrefetchScalarGridSpec(
            num_scalar_prefetch=0,
            grid=(num_partitions, tiles_per_part),
            in_specs=[
                pl.BlockSpec((tile_n, c), row_map),          # streaming logits
                pl.BlockSpec((tile_n, 1), row_map),          # targets tile
                pl.BlockSpec((1, c), lambda p, i: (0, 0)),   # resident class weights
            ],
            out_specs=pl.BlockSpec((1, 1, 1), lambda p, i: (p, 0, 0)),
            scratch_shapes=[pltpu.VMEM((tile_n, 1), jnp.float32)],
        ),
        compiler_params=pltpu.CompilerParams(
            dimension_semantics=("parallel", "arbitrary"),
            vmem_limit_bytes=vmem_limit),
        cost_estimate=cost,
    )(logits, targets_2d, weights_2d)

    return jnp.sum(partials) / jnp.float32(n)


def make_class_weights(samples_per_class, beta=0.9999):
    """Parameter setup (glue) matching ClassBalancedLoss.__init__."""
    spc = samples_per_class.astype(jnp.float32)
    effective_num = 1.0 - jnp.power(beta, spc)
    weights = (1.0 - beta) / effective_num
    weights = weights / weights.sum() * weights.shape[0]
    return weights


def _reference(logits, targets, weights, gamma=2.0):
    lse = jax.nn.logsumexp(logits, axis=-1)
    logit_t = jnp.take_along_axis(logits, targets[:, None], axis=-1)[:, 0]
    ce = lse - logit_t
    pt = jnp.exp(-ce)
    w = weights[targets]
    return jnp.mean(w * (1.0 - pt) ** gamma * ce)


if __name__ == "__main__":
    key = jax.random.PRNGKey(0)
    N, C = 20, 16  # batch (non-multiple of 8 to exercise pad+mask), classes
    k1, k2 = jax.random.split(key)

    logits = jax.random.normal(k1, (N, C), dtype=jnp.float32)
    targets = jax.random.randint(k2, (N,), 0, C, dtype=jnp.int32)

    # deterministic synthetic class counts (imbalanced)
    samples_per_class = jnp.array([1000, 500, 250, 125, 60, 30, 15, 8,
                                   800, 400, 200, 100, 50, 25, 12, 6],
                                  dtype=jnp.float32)
    weights = make_class_weights(samples_per_class, beta=0.9999)

    loss = class_balanced_loss(logits, targets, weights, gamma=2.0)
    loss = jax.block_until_ready(loss)

    ref = _reference(logits, targets, weights, gamma=2.0)
    assert jnp.allclose(loss, ref, rtol=1e-5, atol=1e-5), (loss, ref)

    print("KERNEL_OK")
</pallas_src>

<mosaic_0001>
module attributes {stable_mosaic.version = 11 : i64} {
  func.func @_cb_loss_kernel(%arg0: i32, %arg1: i32, %arg2: memref<24x16xf32, #tpu.memory_space<vmem>>, %arg3: memref<24x1xi32, #tpu.memory_space<vmem>>, %arg4: memref<1x16xf32, #tpu.memory_space<vmem>>, %arg5: memref<1x1x1xf32, #tpu.memory_space<vmem>>, %arg6: memref<24x1xf32, #tpu.memory_space<vmem>>) attributes {dimension_semantics = [#tpu.dimension_semantics<parallel>, #tpu.dimension_semantics<arbitrary>], iteration_bounds = array<i64: 1, 1>, scalar_prefetch = 0 : i64, scratch_operands = 1 : i64, tpu.core_type = #tpu.core_type<tc>, window_params = [{transform_indices = @transform_0, window_bounds = array<i64: 24, 16>}, {transform_indices = @transform_1, window_bounds = array<i64: 24, 1>}, {pipeline_mode = #tpu.pipeline_mode<synchronous>, transform_indices = @transform_2, window_bounds = array<i64: 1, 16>}, {transform_indices = @transform_3, window_bounds = array<i64: 1, 1, 1>}]} {
    %c0_i32 = arith.constant 0 : i32
    %0 = arith.cmpi eq, %arg1, %c0_i32 : i32
    %1 = arith.extui %0 : i1 to i32
    %c0_i32_0 = arith.constant 0 : i32
    %2 = arith.cmpi ne, %1, %c0_i32_0 : i32
    scf.if %2 {
      %cst_23 = arith.constant 0.000000e+00 : f32
      %59 = vector.broadcast %cst_23 : f32 to vector<24x1xf32>
      %c0_24 = arith.constant 0 : index
      %c0_25 = arith.constant 0 : index
      %60 = vector.load %arg6[%c0_24, %c0_25] : memref<24x1xf32, #tpu.memory_space<vmem>>, vector<24x1xf32>
      tpu.vector_store %arg6[%c0_24, %c0_25], %59 {strides = array<i32>} : memref<24x1xf32, #tpu.memory_space<vmem>>, vector<24x1xf32>,
    } else {
    }
    %c0 = arith.constant 0 : index
    %c0_1 = arith.constant 0 : index
    %3 = vector.load %arg2[%c0, %c0_1] : memref<24x16xf32, #tpu.memory_space<vmem>>, vector<24x16xf32>
    %c0_2 = arith.constant 0 : index
    %c0_3 = arith.constant 0 : index
    %4 = vector.load %arg3[%c0_2, %c0_3] : memref<24x1xi32, #tpu.memory_space<vmem>>, vector<24x1xi32>
    %c0_4 = arith.constant 0 : index
    %c0_5 = arith.constant 0 : index
    %5 = vector.load %arg4[%c0_4, %c0_5] : memref<1x16xf32, #tpu.memory_space<vmem>>, vector<1x16xf32>
    %6 = tpu.iota {dimensions = array<i32: 1>} : vector<24x16xi32>
    %7 = vector.broadcast %4 : vector<24x1xi32> to vector<24x16xi32>
    %8 = arith.cmpi eq, %6, %7 : vector<24x16xi32>
    %cst = arith.constant dense<0xFF800000> : vector<24xf32>
    %9 = vector.multi_reduction <maximumf>, %3, %cst [1] : vector<24x16xf32> to vector<24xf32>
    %10 = vector.shape_cast %9 : vector<24xf32> to vector<24x1xf32>
    %11 = vector.broadcast %10 : vector<24x1xf32> to vector<24x16xf32>
    %12 = arith.subf %3, %11 : vector<24x16xf32>
    %13 = math.exp %12 : vector<24x16xf32>
    %cst_6 = arith.constant dense<0.000000e+00> : vector<24xf32>
    %14 = vector.multi_reduction <add>, %13, %cst_6 [1] : vector<24x16xf32> to vector<24xf32>
    %15 = vector.shape_cast %14 : vector<24xf32> to vector<24x1xf32>
    %16 = math.log %15 : vector<24x1xf32>
    %17 = arith.addf %10, %16 : vector<24x1xf32>
    %cst_7 = arith.constant 0.000000e+00 : f32
    %18 = vector.broadcast %cst_7 : f32 to vector<24x16xf32>
    %19 = arith.select %8, %3, %18 : vector<24x16xi1>, vector<24x16xf32>
    %cst_8 = arith.constant dense<0.000000e+00> : vector<24xf32>
    %20 = vector.multi_reduction <add>, %19, %cst_8 [1] : vector<24x16xf32> to vector<24xf32>
    %21 = vector.shape_cast %20 : vector<24xf32> to vector<24x1xf32>
    %cst_9 = arith.constant 0.000000e+00 : f32
    %22 = vector.broadcast %cst_9 : f32 to vector<24x16xf32>
    %23 = arith.select %8, %13, %22 : vector<24x16xi1>, vector<24x16xf32>
    %cst_10 = arith.constant dense<0.000000e+00> : vector<24xf32>
    %24 = vector.multi_reduction <add>, %23, %cst_10 [1] : vector<24x16xf32> to vector<24xf32>
    %25 = vector.shape_cast %24 : vector<24xf32> to vector<24x1xf32>
    %cst_11 = arith.constant 0.000000e+00 : f32
    %26 = vector.shape_cast %5 : vector<1x16xf32> to vector<1x16xf32>
    %27 = vector.broadcast %26 : vector<1x16xf32> to vector<24x16xf32>
    %28 = vector.broadcast %cst_11 : f32 to vector<24x16xf32>
    %29 = arith.select %8, %27, %28 : vector<24x16xi1>, vector<24x16xf32>
    %cst_12 = arith.constant dense<0.000000e+00> : vector<24xf32>
    %30 = vector.multi_reduction <add>, %29, %cst_12 [1] : vector<24x16xf32> to vector<24xf32>
    %31 = vector.shape_cast %30 : vector<24xf32> to vector<24x1xf32>
    %32 = arith.subf %17, %21 : vector<24x1xf32>
    %cst_13 = arith.constant 0.000000e+00 : f32
    %33 = vector.broadcast %cst_13 : f32 to vector<24x1xf32>
    %34 = arith.maximumf %32, %33 : vector<24x1xf32>
    %35 = arith.divf %25, %15 : vector<24x1xf32>
    %cst_14 = arith.constant 1.000000e+00 : f32
    %36 = vector.broadcast %cst_14 : f32 to vector<24x1xf32>
    %37 = arith.minimumf %35, %36 : vector<24x1xf32>
    %cst_15 = arith.constant 1.000000e+00 : f32
    %38 = vector.broadcast %cst_15 : f32 to vector<24x1xf32>
    %39 = arith.subf %38, %37 : vector<24x1xf32>
    %40 = arith.mulf %39, %39 : vector<24x1xf32>
    %41 = arith.mulf %31, %40 : vector<24x1xf32>
    %42 = arith.mulf %41, %34 : vector<24x1xf32>
    %c1_i32 = arith.constant 1 : i32
    %43 = arith.muli %arg0, %c1_i32 : i32
    %44 = arith.addi %43, %arg1 : i32
    %c24_i32 = arith.constant 24 : i32
    %45 = arith.muli %44, %c24_i32 : i32
    %46 = tpu.iota {dimensions = array<i32: 0>} : vector<24x1xi32>
    %47 = vector.broadcast %45 : i32 to vector<24x1xi32>
    %48 = arith.addi %47, %46 : vector<24x1xi32>
    %c20_i32 = arith.constant 20 : i32
    %49 = vector.broadcast %c20_i32 : i32 to vector<24x1xi32>
    %50 = arith.cmpi slt, %48, %49 : vector<24x1xi32>
    %cst_16 = arith.constant 0.000000e+00 : f32
    %51 = vector.broadcast %cst_16 : f32 to vector<24x1xf32>
    %52 = arith.select %50, %42, %51 : vector<24x1xi1>, vector<24x1xf32>
    %c0_17 = arith.constant 0 : index
    %c0_18 = arith.constant 0 : index
    %53 = vector.load %arg6[%c0_17, %c0_18] : memref<24x1xf32, #tpu.memory_space<vmem>>, vector<24x1xf32>
    %54 = arith.addf %53, %52 : vector<24x1xf32>
    %c0_19 = arith.constant 0 : index
    %c0_20 = arith.constant 0 : index
    %55 = vector.load %arg6[%c0_19, %c0_20] : memref<24x1xf32, #tpu.memory_space<vmem>>, vector<24x1xf32>
    tpu.vector_store %arg6[%c0_19, %c0_20], %54 {strides = array<i32>} : memref<24x1xf32, #tpu.memory_space<vmem>>, vector<24x1xf32>,
    %c0_i32_21 = arith.constant 0 : i32
    %56 = arith.cmpi eq, %arg1, %c0_i32_21 : i32
    %57 = arith.extui %56 : i1 to i32
    %c0_i32_22 = arith.constant 0 : i32
    %58 = arith.cmpi ne, %57, %c0_i32_22 : i32
    scf.if %58 {
      %c0_23 = arith.constant 0 : index
      %c0_24 = arith.constant 0 : index
      %59 = vector.load %arg6[%c0_23, %c0_24] : memref<24x1xf32, #tpu.memory_space<vmem>>, vector<24x1xf32>
      %60 = vector.shape_cast %59 : vector<24x1xf32> to vector<1x24x1xf32>
      %cst_25 = arith.constant dense<0.000000e+00> : vector<1xf32>
      %61 = vector.multi_reduction <add>, %60, %cst_25 [1, 2] : vector<1x24x1xf32> to vector<1xf32>
      %62 = vector.shape_cast %61 : vector<1xf32> to vector<1x1x1xf32>
      %63 = vector.extract %62[0, 0, 0] : f32 from vector<1x1x1xf32>
      %64 = vector.broadcast %63 : f32 to vector<1x1x1xf32>
      %c0_26 = arith.constant 0 : index
      %c0_27 = arith.constant 0 : index
      %c0_28 = arith.constant 0 : index
      %65 = vector.load %arg5[%c0_26, %c0_27, %c0_28] : memref<1x1x1xf32, #tpu.memory_space<vmem>>, vector<1x1x1xf32>
      tpu.vector_store %arg5[%c0_26, %c0_27, %c0_28], %64 {strides = array<i32>} : memref<1x1x1xf32, #tpu.memory_space<vmem>>, vector<1x1x1xf32>,
    } else {
    }
    return
  }
  func.func @transform_0(%arg0: i32, %arg1: i32) -> (i32, i32) {
    %c1_i32 = arith.constant 1 : i32
    %0 = arith.muli %arg0, %c1_i32 : i32
    %1 = arith.addi %0, %arg1 : i32
    %c0_i32 = arith.constant 0 : i32
    %c0_i32_0 = arith.constant 0 : i32
    return %1, %c0_i32 : i32, i32
  }
  func.func @transform_1(%arg0: i32, %arg1: i32) -> (i32, i32) {
    %c1_i32 = arith.constant 1 : i32
    %0 = arith.muli %arg0, %c1_i32 : i32
    %1 = arith.addi %0, %arg1 : i32
    %c0_i32 = arith.constant 0 : i32
    %c0_i32_0 = arith.constant 0 : i32
    return %1, %c0_i32 : i32, i32
  }
  func.func @transform_2(%arg0: i32, %arg1: i32) -> (i32, i32) {
    %c0_i32 = arith.constant 0 : i32
    %c0_i32_0 = arith.constant 0 : i32
    %c0_i32_1 = arith.constant 0 : i32
    return %c0_i32, %c0_i32_0 : i32, i32
  }
  func.func @transform_3(%arg0: i32, %arg1: i32) -> (i32, i32, i32) {
    %c0_i32 = arith.constant 0 : i32
    %c0_i32_0 = arith.constant 0 : i32
    %c0_i32_1 = arith.constant 0 : i32
    return %arg0, %c0_i32, %c0_i32_0 : i32, i32, i32
  }
}

</mosaic_0001>

<bundles_post_ra>
// kernel: tpu_custom_call.1
= control target key start
LH: loop header
LB: loop body
LE: loop exit
PB: predicated region body
PF: predicated region fallthrough
CT: control target
= control target key end

     0   :  { %vm88_vm0 = vcmask 130048   ;;  %v319_v5 = vmov 0   ;;  %s422_s0 = inlined_call_operand.vmem [shape: f32[24,16], index: 0, kind: input, shape index: {}]   ;;  %s423_s1 = inlined_call_operand.vmem [shape: s32[24,1], index: 1, kind: input, shape index: {}]   ;;  %s424_s2 = inlined_call_operand.vmem [shape: f32[1,16], index: 2, kind: input, shape index: {}]   ;;  %s425_s3 = inlined_call_operand.hbm [shape: f32[1,1,1], index: 3, kind: output, shape index: {}]  }
   0x1   :  { %v67_v0 = vld [vmem:[%s422_s0] sm:$0xff]  ;;  %v69_v1 = vld [vmem:[%s422_s0 + $0x10] sm:$0xff]  ;;  %v68_v2 = vld [vmem:[%s422_s0 + $0x8] sm:$0xff]  ;;  %275 = vset.pattern.permute.xlu1 %v319_v5  ;;  %276 = vset.pattern.permute.xlu0 %v319_v5 }
   0x2   :  { %v89_v3 = vsel %vm88_vm0, %v67_v0, -inf  ;;  %v95_v4 = vsel %vm88_vm0, %v69_v1, -inf }
   0x3   :  { %90 = vmax.xlane.f32.xlu0 %v89_v3  ;;  %96 = vmax.xlane.f32.xlu1 %v95_v4 }
   0x4   :  { %8 = vsyncpa [#allocation4], 0  ;;  %v92_v6 = vsel %vm88_vm0, %v68_v2, -inf  ;;  %v70_v7 = vld [vmem:[%s423_s1] sm:$0xff]  ;;  %v72_v8 = vld [vmem:[%s423_s1 + $0x10] sm:$0xff]  ;;  %v74_v16 = vlaneseq  ;;  %vm63_vm4 = vcmask 7168  }
   0x5   :  { %v71_v9 = vld [vmem:[%s423_s1 + $0x8] sm:$0xff]  ;;  %v269_v34 = vld [vmem:[%s424_s2] ss:$0 sm:$0xff]  ;;  %v320_v49 = vmov 0.0   ;;  %s321_s2 = smov [#allocation3]   ;;  %vm241_vm6 = vcmask 0  }
   0x6   :  { %v75_v20 = vand.u32 127, %v74_v16  ;;  %65 = vst.msk [vmem:[#allocation2 + $0x8] sm:$0xff] %vm63_vm4, %v320_v49  ;;  %64 = vst.msk [vmem:[#allocation2] sm:$0xff] %vm63_vm4, %v320_v49  ;;  %s249_s24 = sshll.u32 %s321_s2, 4  ;;  %s250_s24 = int_to_ptr.vmem [resolvable:$true] %s249_s24 }
   0x7   :  { %93 = vmax.xlane.f32.xlu0 %v92_v6  ;;  %66 = vst.msk [vmem:[#allocation2 + $0x10] sm:$0xff] %vm63_vm4, %v320_v49  ;;  %s295_s26 = scalar_lea.vmem %s250_s24, 16  ;;  %s299_s27 = scalar_lea.vmem %s250_s24, 32 }
   0x8   :  { %p296_p0 = scmp.ne.s32.totalorder %s250_s24, %s295_s26  ;;  %p300_p1 = scmp.lt.s32.totalorder %s250_s24, %s250_s24 }
   0x9   :  { %p301_p2 = scmp.lt.s32.totalorder %s299_s27, %s295_s26 }
   0xb   :  { %p302_p3 = por %p301_p2, %p300_p1 }
   0xd   :  { %p303_p4 = pnand %p302_p3, %p296_p0 }
  0x14   :  { %77 = vperm.xlu1 %275, %v70_v7  }
  0x18   :  { %83 = vperm.xlu1 %275, %v72_v8  }
  0x1d   :  { %80 = vperm.xlu0 %276, %v71_v9  }
  0x90   :  { %v363_v10 = vpop.xlane.xlu0 %90  ;;  %v366_v13 = vpop.xlane.xlu1 %96 }
  0x91   :  { %v98_v11 = vsub.f32 %v67_v0, %v363_v10  ;;  %v100_v17 = vsub.f32 %v69_v1, %v366_v13 }
  0x93   :  { %v101_v12 = vmul.f32 1.442695, %v98_v11  ;;  %v105_v21 = vmul.f32 1.442695, %v100_v17 }
  0x94   :  { %v368_v14 = vpop.xlane.xlu0 %93  ;;  %v78_v19 = vpop.permute.xlu1 %77 }
  0x95   :  { %277 = vpow2.f32 %v101_v12  ;;  %v99_v15 = vsub.f32 %v68_v2, %v368_v14  ;;  %vm85_vm1 = vcmp.eq.s32.totalorder %v75_v20, %v78_v19 }
  0x96   :  { %v125_v25 = vsel %vm85_vm1, %v67_v0, 0.0  ;;  %v155_v45 = vsel %vm85_vm1, %v269_v34, 0.0 }
  0x97   :  { %v103_v18 = vmul.f32 1.442695, %v99_v15  ;;  %v128_v27 = vsel %vm88_vm0, %v125_v25, 0.0  ;;  %v158_v46 = vsel %vm88_vm0, %v155_v45, 0.0 }
  0x98   :  { %v84_v24 = vpop.permute.xlu1 %83 }
  0x99   :  { %279 = vpow2.f32 %v103_v18  ;;  %vm87_vm3 = vcmp.eq.s32.totalorder %v75_v20, %v84_v24 }
  0x9a   :  { %281 = vpow2.f32 %v105_v21  ;;  %v127_v31 = vsel %vm87_vm3, %v69_v1, 0.0  ;;  %v157_v47 = vsel %vm87_vm3, %v269_v34, 0.0 }
  0x9b   :  { %v134_v33 = vsel %vm88_vm0, %v127_v31, 0.0  ;;  %v164_v48 = vsel %vm88_vm0, %v157_v47, 0.0  ;;  %v210_v31 = vld [vmem:[#allocation2] sm:$0xff] }
  0x9c   :  { %v81_v22 = vpop.permute.xlu0 %80 }
  0x9d   :  { %vm86_vm2 = vcmp.eq.s32.totalorder %v75_v20, %v81_v22  ;;  %v197_v20 = vshrl.u32 %v74_v16, 7 }
  0x9e   :  { %v126_v29 = vsel %vm86_vm2, %v68_v2, 0.0  ;;  %v156_v36 = vsel %vm86_vm2, %v269_v34, 0.0 }
  0x9f   :  { %v278_v23 = vpop.eup %277  ;;  %v131_v32 = vsel %vm88_vm0, %v126_v29, 0.0  ;;  %v161_v38 = vsel %vm88_vm0, %v156_v36, 0.0 }
  0xa0   :  { %v107_v26 = vsel %vm88_vm0, %v278_v23, 0.0  ;;  %v137_v39 = vsel %vm85_vm1, %v278_v23, 0.0 }
  0xa1   :  { %108 = vadd.xlane.f32.xlu1 %v107_v26  ;;  %v140_v40 = vsel %vm88_vm0, %v137_v39, 0.0 }
  0xa3   :  { %v280_v28 = vpop.eup %279 }
  0xa4   :  { %v110_v30 = vsel %vm88_vm0, %v280_v28, 0.0  ;;  %v282_v35 = vpop.eup %281  ;;  %v138_v41 = vsel %vm86_vm2, %v280_v28, 0.0 }
  0xa5   :  { %129 = vadd.xlane.f32.xlu1 %v128_v27  ;;  %111 = vadd.xlane.f32.xlu0 %v110_v30  ;;  %v113_v37 = vsel %vm88_vm0, %v282_v35, 0.0  ;;  %v143_v42 = vsel %vm88_vm0, %v138_v41, 0.0  ;;  %v139_v43 = vsel %vm87_vm3, %v282_v35, 0.0  ;;  %v211_v30 = vld [vmem:[#allocation2 + $0x8] sm:$0xff] }
  0xa6   :  { %v146_v44 = vsel %vm88_vm0, %v139_v43, 0.0 }
  0xa9   :  { %135 = vadd.xlane.f32.xlu0 %v134_v33  ;;  %132 = vadd.xlane.f32.xlu1 %v131_v32  ;;  %v199_v32 = vadd.s32 16, %v197_v20 }
  0xab   :  { %vm206_vm5 = vcmp.lt.s32.totalorder %v199_v32, 20 }
  0xad   :  { %162 = vadd.xlane.f32.xlu0 %v161_v38  ;;  %114 = vadd.xlane.f32.xlu1 %v113_v37 }
  0xb1   :  { %141 = vadd.xlane.f32.xlu1 %v140_v40  ;;  %v212_v40 = vld [vmem:[#allocation2 + $0x10] sm:$0xff] }
  0xb5   :  { %144 = vadd.xlane.f32.xlu1 %v143_v42 }
  0xb9   :  { %147 = vadd.xlane.f32.xlu1 %v146_v44 }
  0xbd   :  { %159 = vadd.xlane.f32.xlu1 %v158_v46 }
  0xc1   :  { %165 = vadd.xlane.f32.xlu1 %v164_v48 }
 0x12e   :  { %v109_v50 = vpop.xlane.xlu1 %108 }
 0x12f   :  { %283 = vlog2.f32 %v109_v50 }
 0x132   :  { %v130_v51 = vpop.xlane.xlu1 %129  ;;  %v112_v52 = vpop.xlane.xlu0 %111 }
 0x133   :  { %285 = vlog2.f32 %v112_v52 }
 0x134   :  { %287 = vrcp.f32 %v109_v50 }
 0x135   :  { %289 = vrcp.f32 %v112_v52 }
 0x136   :  { %v133_v53 = vpop.xlane.xlu1 %132  ;;  %v136_v4 = vpop.xlane.xlu0 %135 }
 0x139   :  { %v284_v55 = vpop.eup %283 }
 0x13a   :  { %v115_v54 = vpop.xlane.xlu1 %114  ;;  %v117_v58 = vmul.f32 0.6931472, %v284_v55  ;;  %v163_v24 = vpop.xlane.xlu0 %162 }
 0x13b   :  { %291 = vlog2.f32 %v115_v54 }
 0x13c   :  { %293 = vrcp.f32 %v115_v54  ;;  %v122_v0 = vadd.f32 %v117_v58, %v363_v10 }
 0x13d   :  { %v286_v56 = vpop.eup %285 }
 0x13e   :  { %v288_v57 = vpop.eup %287  ;;  %v119_v59 = vmul.f32 0.6931472, %v286_v56  ;;  %v142_v60 = vpop.xlane.xlu1 %141  ;;  %v167_v9 = vsub.f32 %v122_v0, %v130_v51 }
 0x13f   :  { %v174_v61 = vmul.f32 %v288_v57, %v142_v60  ;;  %v290_v62 = vpop.eup %289 }
 0x140   :  { %v123_v1 = vadd.f32 %v119_v59, %v368_v14  ;;  %v170_v22 = vmax.f32 %v167_v9, 0.0 }
 0x141   :  { %v179_v63 = vmin.f32 %v174_v61, 1.0 }
 0x142   :  { %v145_v2 = vpop.xlane.xlu1 %144  ;;  %v168_v11 = vsub.f32 %v123_v1, %v133_v53 }
 0x143   :  { %v176_v3 = vmul.f32 %v290_v62, %v145_v2  ;;  %v182_v6 = vsub.f32 1.0, %v179_v63 }
 0x144   :  { %v171_v23 = vmax.f32 %v168_v11, 0.0 }
 0x145   :  { %v292_v5 = vpop.eup %291  ;;  %v180_v7 = vmin.f32 %v176_v3, 1.0  ;;  %v185_v10 = vmul.f32 %v182_v6, %v182_v6 }
 0x146   :  { %v294_v8 = vpop.eup %293  ;;  %v121_v12 = vmul.f32 0.6931472, %v292_v5  ;;  %v148_v15 = vpop.xlane.xlu1 %147 }
 0x147   :  { %v183_v17 = vsub.f32 1.0, %v180_v7  ;;  %v178_v18 = vmul.f32 %v294_v8, %v148_v15 }
 0x148   :  { %v124_v19 = vadd.f32 %v121_v12, %v366_v13 }
 0x149   :  { %v186_v21 = vmul.f32 %v183_v17, %v183_v17  ;;  %v181_v14 = vmin.f32 %v178_v18, 1.0 }
 0x14a   :  { %v160_v25 = vpop.xlane.xlu1 %159  ;;  %v169_v29 = vsub.f32 %v124_v19, %v136_v4 }
 0x14b   :  { %v189_v26 = vmul.f32 %v186_v21, %v163_v24  ;;  %v184_v27 = vsub.f32 1.0, %v181_v14  ;;  %v188_v28 = vmul.f32 %v185_v10, %v160_v25 }
 0x14c   :  { %v172_v37 = vmax.f32 %v169_v29, 0.0 }
 0x14d   :  { %v192_v33 = vmul.f32 %v189_v26, %v171_v23  ;;  %v187_v34 = vmul.f32 %v184_v27, %v184_v27  ;;  %v191_v35 = vmul.f32 %v188_v28, %v170_v22 }
 0x14e   :  { %v166_v13 = vpop.xlane.xlu1 %165 }
 0x14f   :  { %v214_v36 = vadd.f32 %v211_v30, %v192_v33  ;;  %v213_v16 = vadd.f32 %v210_v31, %v191_v35  ;;  %v190_v38 = vmul.f32 %v187_v34, %v166_v13 }
 0x151   :  { %218 = vst.msk [vmem:[#allocation2 + $0x8] sm:$0xff] %vm63_vm4, %v214_v36  ;;  %217 = vst.msk [vmem:[#allocation2] sm:$0xff] %vm63_vm4, %v213_v16  ;;  %v193_v39 = vmul.f32 %v190_v38, %v172_v37 }
 0x153   :  { %v209_v41 = vsel %vm206_vm5, %v193_v39, 0.0 }
 0x154   :  { %v215_v42 = vadd.f32 %v212_v40, %v209_v41 }
 0x156   :  { %219 = vst.msk [vmem:[#allocation2 + $0x10] sm:$0xff] %vm63_vm4, %v215_v42 }
 0x158   :  { %v223_v43 = vld [vmem:[#allocation2] sm:$0xff]  ;;  %v224_v44 = vld [vmem:[#allocation2 + $0x8] sm:$0xff] }
 0x159   :  { %v226_v45 = vsel %vm63_vm4, %v223_v43, 0.0  ;;  %v227_v46 = vsel %vm63_vm4, %v224_v44, 0.0 }
 0x15a   :  { %v228_v48 = vadd.f32 %v227_v46, %v226_v45 }
 0x15d   :  { %v225_v47 = vld [vmem:[#allocation2 + $0x10] sm:$0xff] }
 0x15e   :  { %v229_v49 = vsel %vm63_vm4, %v225_v47, 0.0 }
 0x15f   :  { %v230_v50 = vadd.f32 %v229_v49, %v228_v48 }
 0x161   :  { %231 = vadd.xlane.f32.xlu0 %v230_v50 }
 0x1ee   :  { %v232_v51 = vpop.xlane.xlu0 %231 }
 0x1ef   :  { %v233_v52 = vrot.slane %v232_v51, 4 }
 0x1f1   :  { %v234_v53 = vadd.f32 %v233_v52, %v232_v51 }
 0x1f3   :  { %v235_v54 = vrot.slane %v234_v53, 2 }
 0x1f5   :  { %v236_v55 = vadd.f32 %v235_v54, %v234_v53 }
 0x1f7   :  { %v237_v56 = vrot.slane %v236_v55, 1 }
 0x1f9   :  { %v238_v57 = vadd.f32 %v237_v56, %v236_v55 }
 0x1fb   :  { %270 = vpush %v238_v57 }
 0x22c   :  { %s271_s25 = spop %270 }
 0x22d   :  { %v240_v58 = vstv %s271_s25 }
 0x22e   :  { %242 = vst.msk [vmem:[#allocation3] sm:$0x1] %vm241_vm6, %v240_v58 }
 0x22f   :  { %306 = shalt.err (!%p303_p4)
}
 0x230   :  { %s307_s30 = scalar_lea.hbm %s425_s3, 16 }
 0x231   :  { %p308_p5 = scmp.ne.s32.totalorder %s425_s3, %s307_s30  ;;  %p311_p6 = scmp.lt.u32.totalorder %s307_s30, %s425_s3 }
 0x233   :  { %p313_p7 = pnand %p311_p6, %p308_p5 }
 0x235   :  { %316 = shalt.err (!%p313_p7)
}
 0x236   :  { %252 = dma.vmem_to_hbm [thread:$0]  %s250_s24, 16, %s425_s3, [#allocation4]  }
 0x237   :  { %317 = dma.done.wait [#allocation4], 16  }
 0x238   :  { %318 = vsyncadd [#allocation4], 4294967280 }
 0x239   :  { %256 = vsyncpa [#allocation4], 1 }

</bundles_post_ra>
